<compile_context>
chip_gen: v7x
topology: tpu7x:2x2x1
jax: 0.10.0
libtpu: 0.0.40
codegen_flags: <defaults>
</compile_context>

<pallas_src>
import functools

import jax
import jax.numpy as jnp
from jax.experimental import pallas as pl
from jax.experimental.pallas import tpu as pltpu


def _round_up(x, m):
    return ((x + m - 1) // m) * m


def _chip_info():
    """Returns (physical VMEM bytes, TensorCores per device) with safe fallbacks."""
    vmem = 64 << 20  # conservative fallback (v7x-sized)
    try:
        vmem = int(pltpu.get_tpu_info().vmem_capacity_bytes)
    except Exception:
        pass
    cores = 1
    try:
        kind = jax.devices()[0].device_kind.lower()
        # 2 TensorCores per device on v4 / v5p (megacore) and v7x.
        if any(t in kind for t in ("v4", "v5p", "v7")):
            cores = 2
    except Exception:
        pass
    return vmem, cores


def _mlp_kernel(x_ref, w1_ref, b1_ref, w2_ref, b2_ref, o_ref):
    # x_ref:  (tm, H)    row tile of activations (caller dtype)
    # w1_ref: (H, H2p)   Linear1 weight, pre-transposed, lane-padded, resident
    # b1_ref: (1, H2p)   f32
    # w2_ref: (H2p, T)   Linear2 weight, pre-transposed, resident
    # b2_ref: (1, T)     f32
    # o_ref:  (tm, T)
    #
    # NOTE: the last row block may be ragged; its out-of-bounds rows contain
    # unspecified VMEM data.  This is safe because every output row depends
    # only on its own input row and OOB output rows are never stored back --
    # do NOT add cross-row reductions here without masking.
    cdt = w1_ref.dtype
    h = jnp.dot(x_ref[...].astype(cdt), w1_ref[...],
                preferred_element_type=jnp.float32)
    h = jnp.maximum(h + b1_ref[...], 0.0)          # bias + ReLU in f32
    # Dropout: inference mode -> identity.
    # TODO(synk): training-mode dropout would use pltpu.prng_seed/prng_random_bits.
    y = jnp.dot(h.astype(w2_ref.dtype), w2_ref[...],
                preferred_element_type=jnp.float32)
    o_ref[...] = (y + b2_ref[...]).astype(o_ref.dtype)


@functools.partial(jax.jit, static_argnames=("tm", "compute_dtype"))
def multi_nonlinear_classifier(x, w1, b1, w2, b2, *, tm=512, compute_dtype=None):
    """x: [..., hidden] -> [..., tag_size].

    compute_dtype: dtype used for the (tiny) weight operands of the matmuls
    (e.g. jnp.bfloat16).  The activation tensor x is never cast or copied in
    this wrapper -- pass bf16 activations to actually halve HBM traffic.
    Accumulation, bias add and ReLU are always f32.
    """
    orig_shape = x.shape
    hidden = orig_shape[-1]
    h2 = w1.shape[1]
    tag = w2.shape[1]
    out_dtype = x.dtype
    wdt = jnp.dtype(compute_dtype) if compute_dtype is not None else jnp.dtype(w1.dtype)

    x2d = x.reshape(-1, hidden)          # no cast: single HBM read in the kernel
    m = x2d.shape[0]

    # --- lane-dense padding of the small intermediate dim -------------------
    # Exact math: padded W1 columns give ReLU(x@0 + 0) = 0 and the matching
    # padded W2 rows are zero.  Only tiny weight tensors are padded; tag is
    # NOT padded (output written unpadded).
    h2p = _round_up(h2, 128)
    w1c = w1.astype(wdt)
    w2c = w2.astype(wdt)
    b1f = b1.astype(jnp.float32).reshape(1, h2)
    b2f = b2.astype(jnp.float32).reshape(1, tag)
    if h2p != h2:
        w1c = jnp.pad(w1c, ((0, 0), (0, h2p - h2)))
        b1f = jnp.pad(b1f, ((0, 0), (0, h2p - h2)))
        w2c = jnp.pad(w2c, ((0, h2p - h2), (0, 0)))

    vmem_cap, num_cores = _chip_info()
    budget = vmem_cap - max(8 << 20, vmem_cap // 8)   # headroom for Mosaic scratch

    # --- row tile ------------------------------------------------------------
    x_bytes = jnp.dtype(x.dtype).itemsize
    out_bytes = jnp.dtype(out_dtype).itemsize
    w_bytes = jnp.dtype(wdt).itemsize
    sublane = 8 if x_bytes >= 4 else (16 if x_bytes == 2 else 32)

    tm_eff = min(tm, _round_up(m, sublane))
    if num_cores > 1:
        # Give each TensorCore >= 2 pipelined grid steps when M allows.
        want = _round_up(pl.cdiv(m, 2 * num_cores), sublane)
        tm_eff = min(tm_eff, max(want, sublane))
    tm_eff = _round_up(max(tm_eff, sublane), sublane)

    def vmem_need(t):
        return (2 * (w1c.size + w2c.size) * w_bytes      # resident weights (assume 2x buffered)
                + 2 * (b1f.size + b2f.size) * 4
                + 2 * t * hidden * x_bytes                # double-buffered x tiles
                + 2 * t * tag * out_bytes                 # double-buffered out tiles
                + t * h2p * 4 + t * tag * 4)              # f32 intermediates

    # Shrink the row tile (not the limit) until the kernel fits the budget.
    while tm_eff > sublane and vmem_need(tm_eff) > budget:
        tm_eff = max(sublane, _round_up(tm_eff // 2, sublane))

    grid_m = pl.cdiv(m, tm_eff)   # ragged last block handled by Pallas (no jnp.pad of x)

    need = vmem_need(tm_eff)
    vmem_limit = None
    if need > (16 << 20):
        # Raise the scoped limit above the default, but never past the
        # headroom-adjusted physical budget.
        vmem_limit = int(min(max(need * 5 // 4, 32 << 20), budget))

    flops = 2 * m * (hidden * h2p + h2p * tag)
    bytes_accessed = (x2d.size * x_bytes
                      + (w1c.size + w2c.size) * w_bytes
                      + (b1f.size + b2f.size) * 4
                      + m * tag * out_bytes)
    cost = pl.CostEstimate(flops=flops, transcendentals=0,
                           bytes_accessed=bytes_accessed)

    out = pl.pallas_call(
        _mlp_kernel,
        out_shape=jax.ShapeDtypeStruct((m, tag), out_dtype),
        grid_spec=pltpu.PrefetchScalarGridSpec(
            num_scalar_prefetch=0,
            grid=(grid_m,),
            in_specs=[
                pl.BlockSpec((tm_eff, hidden), lambda i: (i, 0)),  # x rows tile
                pl.BlockSpec((hidden, h2p), lambda i: (0, 0)),     # W1 (resident)
                pl.BlockSpec((1, h2p), lambda i: (0, 0)),          # b1
                pl.BlockSpec((h2p, tag), lambda i: (0, 0)),        # W2 (resident)
                pl.BlockSpec((1, tag), lambda i: (0, 0)),          # b2
            ],
            out_specs=pl.BlockSpec((tm_eff, tag), lambda i: (i, 0)),
        ),
        compiler_params=pltpu.CompilerParams(
            dimension_semantics=("parallel",),
            vmem_limit_bytes=vmem_limit),
        cost_estimate=cost,
    )(x2d, w1c, b1f, w2c, b2f)

    return out.reshape(*orig_shape[:-1], tag)


def init_params(key, hidden_size, tag_size, dtype=jnp.float32):
    """Deterministic init matching nn.Linear default (U(-1/sqrt(fan_in), +))."""
    h2 = hidden_size // 2
    k1, k2, k3, k4 = jax.random.split(key, 4)
    lim1 = 1.0 / jnp.sqrt(hidden_size)
    lim2 = 1.0 / jnp.sqrt(h2)
    # Stored as [in, out] (transposed vs PyTorch's [out, in]).
    w1 = jax.random.uniform(k1, (hidden_size, h2), dtype, -lim1, lim1)
    b1 = jax.random.uniform(k2, (h2,), dtype, -lim1, lim1)
    w2 = jax.random.uniform(k3, (h2, tag_size), dtype, -lim2, lim2)
    b2 = jax.random.uniform(k4, (tag_size,), dtype, -lim2, lim2)
    return w1, b1, w2, b2


if __name__ == "__main__":
    batch, seq, hidden, tag_size = 2, 8, 32, 8
    dropout_rate = 0.1  # unused in inference mode

    key = jax.random.PRNGKey(0)
    kx, kp = jax.random.split(key)
    x = jax.random.normal(kx, (batch, seq, hidden), jnp.float32)
    w1, b1, w2, b2 = init_params(kp, hidden, tag_size)

    # Pure-JAX reference (PyTorch eval-mode forward).
    ref = jnp.maximum(x.reshape(-1, hidden) @ w1 + b1, 0.0) @ w2 + b2
    ref = ref.reshape(batch, seq, tag_size)

    # f32 path: matches the PyTorch eval-mode forward.
    out = multi_nonlinear_classifier(x, w1, b1, w2, b2)
    out = jax.block_until_ready(out)
    assert out.shape == (batch, seq, tag_size)
    assert jnp.allclose(out, ref, atol=1e-5, rtol=1e-5)

    # bf16 bandwidth path: caller supplies bf16 activations (no wrapper cast),
    # weights cast to bf16; f32 accumulation keeps the deviation small.
    x_bf16 = x.astype(jnp.bfloat16)
    out_bf16 = multi_nonlinear_classifier(x_bf16, w1, b1, w2, b2,
                                          compute_dtype=jnp.bfloat16)
    out_bf16 = jax.block_until_ready(out_bf16)
    assert out_bf16.shape == (batch, seq, tag_size)
    assert jnp.allclose(out_bf16.astype(jnp.float32), ref, atol=2e-1, rtol=2e-1)

    print("KERNEL_OK")
</pallas_src>

<mosaic_0001>
module attributes {stable_mosaic.version = 11 : i64} {
  func.func @_mlp_kernel(%arg0: i32, %arg1: memref<16x32xf32, #tpu.memory_space<vmem>>, %arg2: memref<32x128xf32, #tpu.memory_space<vmem>>, %arg3: memref<1x128xf32, #tpu.memory_space<vmem>>, %arg4: memref<128x8xf32, #tpu.memory_space<vmem>>, %arg5: memref<1x8xf32, #tpu.memory_space<vmem>>, %arg6: memref<16x8xf32, #tpu.memory_space<vmem>>) attributes {dimension_semantics = [#tpu.dimension_semantics<parallel>], iteration_bounds = array<i64: 1>, scalar_prefetch = 0 : i64, scratch_operands = 0 : i64, tpu.core_type = #tpu.core_type<tc>, window_params = [{transform_indices = @transform_0, window_bounds = array<i64: 16, 32>}, {pipeline_mode = #tpu.pipeline_mode<synchronous>, transform_indices = @transform_1, window_bounds = array<i64: 32, 128>}, {pipeline_mode = #tpu.pipeline_mode<synchronous>, transform_indices = @transform_2, window_bounds = array<i64: 1, 128>}, {pipeline_mode = #tpu.pipeline_mode<synchronous>, transform_indices = @transform_3, window_bounds = array<i64: 128, 8>}, {pipeline_mode = #tpu.pipeline_mode<synchronous>, transform_indices = @transform_4, window_bounds = array<i64: 1, 8>}, {transform_indices = @transform_5, window_bounds = array<i64: 16, 8>}]} {
    %c0 = arith.constant 0 : index
    %c0_0 = arith.constant 0 : index
    %0 = vector.load %arg1[%c0, %c0_0] : memref<16x32xf32, #tpu.memory_space<vmem>>, vector<16x32xf32>
    %c0_1 = arith.constant 0 : index
    %c0_2 = arith.constant 0 : index
    %1 = vector.load %arg2[%c0_1, %c0_2] : memref<32x128xf32, #tpu.memory_space<vmem>>, vector<32x128xf32>
    %cst = arith.constant dense<0.000000e+00> : vector<16x128xf32>
    %2 = tpu.matmul %0, %1, %cst {dimension_numbers = #tpu.dot_dimension_numbers<[1], [0], [0], [1], [0, 0, 1, 1], [], []>} : vector<16x32xf32>, vector<32x128xf32>, vector<16x128xf32> -> vector<16x128xf32>
    %c0_3 = arith.constant 0 : index
    %c0_4 = arith.constant 0 : index
    %3 = vector.load %arg3[%c0_3, %c0_4] : memref<1x128xf32, #tpu.memory_space<vmem>>, vector<1x128xf32>
    %4 = vector.broadcast %3 : vector<1x128xf32> to vector<16x128xf32>
    %5 = arith.addf %2, %4 : vector<16x128xf32>
    %cst_5 = arith.constant 0.000000e+00 : f32
    %6 = vector.broadcast %cst_5 : f32 to vector<16x128xf32>
    %7 = arith.maximumf %5, %6 : vector<16x128xf32>
    %c0_6 = arith.constant 0 : index
    %c0_7 = arith.constant 0 : index
    %8 = vector.load %arg4[%c0_6, %c0_7] : memref<128x8xf32, #tpu.memory_space<vmem>>, vector<128x8xf32>
    %cst_8 = arith.constant dense<0.000000e+00> : vector<16x8xf32>
    %9 = tpu.matmul %7, %8, %cst_8 {dimension_numbers = #tpu.dot_dimension_numbers<[1], [0], [0], [1], [0, 0, 1, 1], [], []>} : vector<16x128xf32>, vector<128x8xf32>, vector<16x8xf32> -> vector<16x8xf32>
    %c0_9 = arith.constant 0 : index
    %c0_10 = arith.constant 0 : index
    %10 = vector.load %arg5[%c0_9, %c0_10] : memref<1x8xf32, #tpu.memory_space<vmem>>, vector<1x8xf32>
    %11 = vector.broadcast %10 : vector<1x8xf32> to vector<16x8xf32>
    %12 = arith.addf %9, %11 : vector<16x8xf32>
    %c0_11 = arith.constant 0 : index
    %c0_12 = arith.constant 0 : index
    %13 = vector.load %arg6[%c0_11, %c0_12] : memref<16x8xf32, #tpu.memory_space<vmem>>, vector<16x8xf32>
    tpu.vector_store %arg6[%c0_11, %c0_12], %12 {strides = array<i32>} : memref<16x8xf32, #tpu.memory_space<vmem>>, vector<16x8xf32>,
    return
  }
  func.func @transform_0(%arg0: i32) -> (i32, i32) {
    %c0_i32 = arith.constant 0 : i32
    %c0_i32_0 = arith.constant 0 : i32
    return %arg0, %c0_i32 : i32, i32
  }
  func.func @transform_1(%arg0: i32) -> (i32, i32) {
    %c0_i32 = arith.constant 0 : i32
    %c0_i32_0 = arith.constant 0 : i32
    %c0_i32_1 = arith.constant 0 : i32
    return %c0_i32, %c0_i32_0 : i32, i32
  }
  func.func @transform_2(%arg0: i32) -> (i32, i32) {
    %c0_i32 = arith.constant 0 : i32
    %c0_i32_0 = arith.constant 0 : i32
    %c0_i32_1 = arith.constant 0 : i32
    return %c0_i32, %c0_i32_0 : i32, i32
  }
  func.func @transform_3(%arg0: i32) -> (i32, i32) {
    %c0_i32 = arith.constant 0 : i32
    %c0_i32_0 = arith.constant 0 : i32
    %c0_i32_1 = arith.constant 0 : i32
    return %c0_i32, %c0_i32_0 : i32, i32
  }
  func.func @transform_4(%arg0: i32) -> (i32, i32) {
    %c0_i32 = arith.constant 0 : i32
    %c0_i32_0 = arith.constant 0 : i32
    %c0_i32_1 = arith.constant 0 : i32
    return %c0_i32, %c0_i32_0 : i32, i32
  }
  func.func @transform_5(%arg0: i32) -> (i32, i32) {
    %c0_i32 = arith.constant 0 : i32
    %c0_i32_0 = arith.constant 0 : i32
    return %arg0, %c0_i32 : i32, i32
  }
}

</mosaic_0001>

<bundles_post_ra>
// kernel: multi_nonlinear_classifier.1
= control target key start
LH: loop header
LB: loop body
LE: loop exit
PB: predicated region body
PF: predicated region fallthrough
CT: control target
= control target key end

     0   :  { %vm34_vm0 = vcmask 261120   ;;  %s495_s0 = inlined_call_operand.vmem [shape: f32[16,32], index: 0, kind: input, shape index: {}]   ;;  %s496_s1 = inlined_call_operand.vmem [shape: f32[32,128], index: 1, kind: input, shape index: {}]   ;;  %s497_s2 = inlined_call_operand.vmem [shape: f32[1,128], index: 2, kind: input, shape index: {}]   ;;  %s498_s3 = inlined_call_operand.vmem [shape: f32[128,8], index: 3, kind: input, shape index: {}]   ;;  %s499_s4 = inlined_call_operand.vmem [shape: f32[1,8], index: 4, kind: input, shape index: {}]   ;;  %s500_s5 = inlined_call_operand.hbm [shape: f32[16,8], index: 5, kind: output, shape index: {}]  }
   0x1   :  { %v23_v0 = vld [vmem:[%s496_s1] sm:$0xff]  ;;  %v24_v1 = vld [vmem:[%s496_s1 + $0x8] sm:$0xff]  ;;  %v25_v2 = vld [vmem:[%s496_s1 + $0x10] sm:$0xff] }
   0x2   :  { %v309_v3 = vpack.c.bf16 %v24_v1, %v23_v0  ;;  %v26_v4 = vld [vmem:[%s496_s1 + $0x18] sm:$0xff]  ;;  %v21_v5 = vld [vmem:[%s495_s0] sm:$0xff]  ;;  %v119_v8 = vld [vmem:[%s498_s3 + $0x8] sm:$0xff] }
   0x3   :  { %v313_v6 = vpack.c.bf16 %v26_v4, %v25_v2  ;;  %271 = vmatprep.mubr.msk.f32.mxu0 %vm34_vm0, %v21_v5  ;;  %v118_v7 = vld [vmem:[%s498_s3] sm:$0xff]  ;;  %v120_v9 = vld [vmem:[%s498_s3 + $0x10] sm:$0xff]  ;;  %v121_v11 = vld [vmem:[%s498_s3 + $0x18] sm:$0xff] }
   0x4   :  { %310 = vmatprep.subr.bf16.mxu0 %v309_v3  ;;  %v317_v10 = vpack.c.bf16 %v119_v8, %v118_v7  ;;  %v321_v12 = vpack.c.bf16 %v121_v11, %v120_v9  ;;  %v122_v13 = vld [vmem:[%s498_s3 + $0x20] sm:$0xff]  ;;  %v123_v14 = vld [vmem:[%s498_s3 + $0x28] sm:$0xff] }
   0x5   :  { %312 = vmatpush3.bf16.msra.mxu0 %v309_v3 }
   0x6   :  { %314 = vmatprep.subr.bf16.mxu0 %v313_v6  ;;  %318 = vmatprep.subr.bf16.mxu1 %v317_v10 }
   0x7   :  { %320 = vmatpush3.bf16.msra.mxu1 %v317_v10 }
   0x8   :  { %10 = vsyncpa [#allocation3], 0  ;;  %322 = vmatprep.subr.bf16.mxu1 %v321_v12  ;;  %v325_v15 = vpack.c.bf16 %v123_v14, %v122_v13  ;;  %v22_v16 = vld [vmem:[%s495_s0 + $0x8] sm:$0xff]  ;;  %v124_v17 = vld [vmem:[%s498_s3 + $0x30] sm:$0xff]  ;;  %vm216_vm1 = vcmask 64512  }
   0x9   :  { %316 = vmatpush3.bf16.msra.mxu0 %v313_v6  ;;  %v125_v18 = vld [vmem:[%s498_s3 + $0x38] sm:$0xff]  ;;  %v126_v20 = vld [vmem:[%s498_s3 + $0x40] sm:$0xff]  ;;  %v127_v21 = vld [vmem:[%s498_s3 + $0x48] sm:$0xff] }
   0xa   :  { %v329_v19 = vpack.c.bf16 %v125_v18, %v124_v17  ;;  %v333_v22 = vpack.c.bf16 %v127_v21, %v126_v20  ;;  %v128_v23 = vld [vmem:[%s498_s3 + $0x50] sm:$0xff]  ;;  %v129_v24 = vld [vmem:[%s498_s3 + $0x58] sm:$0xff]  ;;  %v130_v26 = vld [vmem:[%s498_s3 + $0x60] sm:$0xff] }
   0xb   :  { %324 = vmatpush3.bf16.msra.mxu1 %v321_v12  ;;  %v337_v25 = vpack.c.bf16 %v129_v24, %v128_v23  ;;  %v131_v27 = vld [vmem:[%s498_s3 + $0x68] sm:$0xff]  ;;  %v132_v29 = vld [vmem:[%s498_s3 + $0x70] sm:$0xff]  ;;  %v133_v30 = vld [vmem:[%s498_s3 + $0x78] sm:$0xff]  ;;  %s376_s3 = smov [#allocation2]  }
   0xc   :  { %272 = vmatmul.mubr.msk.f32.vlgmr.msra.gmra.mrb[0].mxu0 %vm34_vm0, %v22_v16  ;;  %326 = vmatprep.subr.bf16.mxu1 %v325_v15  ;;  %v341_v28 = vpack.c.bf16 %v131_v27, %v130_v26  ;;  %v345_v31 = vpack.c.bf16 %v133_v30, %v132_v29  ;;  %v235_v32 = vld [vmem:[%s497_s2] ss:$0 sm:$0xff]  ;;  %s224_s13 = sshll.u32 %s376_s3, 4  ;;  %s225_s13 = int_to_ptr.vmem [resolvable:$true] %s224_s13 }
   0xd   :  { %v238_v39 = vld [vmem:[%s499_s4] ss:$0 sm:$0xff]  ;;  %s352_s2 = scalar_lea.vmem %s225_s13, 256  ;;  %p357_p1 = scmp.lt.s32.totalorder %s225_s13, %s225_s13 }
   0xe   :  { %p353_p0 = scmp.ne.s32.totalorder %s225_s13, %s352_s2  ;;  %p358_p2 = scmp.lt.s32.totalorder %s352_s2, %s352_s2 }
   0xf   :  { %328 = vmatpush3.bf16.msra.mxu1 %v325_v15 }
  0x10   :  { %330 = vmatprep.subr.bf16.mxu1 %v329_v19  ;;  %p359_p3 = por %p358_p2, %p357_p1 }
  0x12   :  { %p360_p4 = pnand %p359_p3, %p353_p0 }
  0x13   :  { %332 = vmatpush3.bf16.msra.mxu1 %v329_v19 }
  0x14   :  { %334 = vmatprep.subr.bf16.mxu1 %v333_v22 }
  0x17   :  { %336 = vmatpush3.bf16.msra.mxu1 %v333_v22 }
  0x18   :  { %338 = vmatprep.subr.bf16.mxu1 %v337_v25 }
  0x1b   :  { %340 = vmatpush3.bf16.msra.mxu1 %v337_v25 }
  0x1c   :  { %342 = vmatprep.subr.bf16.mxu1 %v341_v28 }
  0x1f   :  { %344 = vmatpush3.bf16.msra.mxu1 %v341_v28 }
  0x20   :  { %346 = vmatprep.subr.bf16.mxu1 %v345_v31 }
  0x23   :  { %348 = vmatpush3.bf16.msra.mxu1 %v345_v31 }
  0xdf   :  { %v273_v33 = vpop.f32.mrb[0].mxu0 }
  0xe0   :  { %v113_v34 = vadd.f32 %v273_v33, %v235_v32  ;;  %v107_v35 = vpop.f32.mrb[1].mxu0 }
  0xe1   :  { %v108_v36 = vadd.f32 %v235_v32, %v107_v35 }
  0xe2   :  { %v117_v38 = vmax.f32 %v113_v34, 0.0 }
  0xe3   :  { %v116_v37 = vmax.f32 %v108_v36, 0.0 }
  0xe5   :  { %306 = vmatprep.mubr.f32.mxu1 %v116_v37 }
  0xe6   :  { %307 = vmatmul.mubr.f32.vlgmr.msra.gmra.mrb[0].mxu1 %v117_v38 }
 0x1b9   :  { %v308_v40 = vpop.f32.mrb[0].mxu1 }
 0x1ba   :  { %v213_v41 = vadd.f32 %v308_v40, %v238_v39  ;;  %v207_v42 = vpop.f32.mrb[1].mxu1 }
 0x1bb   :  { %v208_v43 = vadd.f32 %v238_v39, %v207_v42 }
 0x1bc   :  { %218 = vst.msk [vmem:[#allocation2 + $0x8] sm:$0xff] %vm216_vm1, %v213_v41 }
 0x1bd   :  { %217 = vst.msk [vmem:[#allocation2] sm:$0xff] %vm216_vm1, %v208_v43 }
 0x1be   :  { %363 = shalt.err (!%p360_p4)
}
 0x1bf   :  { %s364_s4 = scalar_lea.hbm %s500_s5, 256 }
 0x1c0   :  { %p365_p5 = scmp.ne.s32.totalorder %s500_s5, %s364_s4  ;;  %p368_p6 = scmp.lt.u32.totalorder %s364_s4, %s500_s5 }
 0x1c2   :  { %p370_p7 = pnand %p368_p6, %p365_p5 }
 0x1c4   :  { %373 = shalt.err (!%p370_p7)
}
 0x1c5   :  { %s377_s20 = smov 128   ;;  %s378_s21 = smov 8  }
 0x1c6   :  { %230 = dma.vmem_to_hbm [thread:$0]  %s225_s13, 256, %s500_s5, [#allocation3], %s377_s20, %s377_s20, %s378_s21  }
 0x1c7   :  { %374 = dma.done.wait [#allocation3], 256  }
 0x1c8   :  { %375 = vsyncadd [#allocation3], 4294967040 }
 0x1c9   :  { %234 = vsyncpa [#allocation3], 1 }

</bundles_post_ra>
